<compile_context>
chip_gen: v5e
topology: v5e:2x2
jax: 0.10.0
libtpu: 0.0.40
codegen_flags: <defaults>
</compile_context>

<pallas_src>
import functools

import jax
import jax.numpy as jnp
from jax.experimental import pallas as pl
from jax.experimental.pallas import tpu as pltpu

PAD = 128      # fused width: 2 * hidden (64) = 128 lanes
HIDDEN = 64


def _round_up(x, m):
    return (x + m - 1) // m * m


def ppo_fused_kernel(x_ref, w_ref, b_ref, out_ref, *, action_dim):
    x = x_ref[...]                                                  # (TB, PAD)

    # layer 1: actor|critic side-by-side
    h = jnp.dot(x, w_ref[0], preferred_element_type=jnp.float32) + b_ref[0]
    h = jnp.maximum(h, 0.0)
    # layer 2: block-diagonal(actor, critic)
    h = jnp.dot(h, w_ref[1], preferred_element_type=jnp.float32) + b_ref[1]
    h = jnp.maximum(h, 0.0)
    # layer 3: block-diagonal -> lanes [mean | std_raw | value | zero-pad]
    raw = jnp.dot(h, w_ref[2], preferred_element_type=jnp.float32) + b_ref[2]

    # softplus + 1e-5 only on the std lanes; one vreg-wide select
    lane = jax.lax.broadcasted_iota(jnp.int32, raw.shape, 1)
    is_std = (lane >= action_dim) & (lane < 2 * action_dim)
    out_ref[...] = jnp.where(is_std, jnp.logaddexp(raw, 0.0) + 1e-5, raw)


def fuse_params(params, state_dim, action_dim, hidden=HIDDEN, pad=PAD):
    """Concatenate actor/critic weights into lane-wide fused slabs (done once)."""
    assert 2 * hidden <= pad and state_dim <= pad and 2 * action_dim + 1 <= pad

    w1 = jnp.zeros((pad, pad), jnp.float32)
    w1 = w1.at[:state_dim, :hidden].set(params["aw1"])
    w1 = w1.at[:state_dim, hidden:2 * hidden].set(params["cw1"])

    w2 = jnp.zeros((pad, pad), jnp.float32)
    w2 = w2.at[:hidden, :hidden].set(params["aw2"])
    w2 = w2.at[hidden:2 * hidden, hidden:2 * hidden].set(params["cw2"])

    w3 = jnp.zeros((pad, pad), jnp.float32)
    w3 = w3.at[:hidden, :2 * action_dim].set(params["aw3"])
    w3 = w3.at[hidden:2 * hidden, 2 * action_dim:2 * action_dim + 1].set(params["cw3"])

    b1 = jnp.zeros((1, pad), jnp.float32)
    b1 = b1.at[:, :hidden].set(params["ab1"]).at[:, hidden:2 * hidden].set(params["cb1"])
    b2 = jnp.zeros((1, pad), jnp.float32)
    b2 = b2.at[:, :hidden].set(params["ab2"]).at[:, hidden:2 * hidden].set(params["cb2"])
    b3 = jnp.zeros((1, pad), jnp.float32)
    b3 = b3.at[:, :2 * action_dim].set(params["ab3"])
    b3 = b3.at[:, 2 * action_dim:2 * action_dim + 1].set(params["cb3"])

    w_slab = jnp.stack([w1, w2, w3])          # (3, PAD, PAD)
    b_slab = jnp.stack([b1, b2, b3])          # (3, 1, PAD)
    return w_slab, b_slab


def ppo_forward(x, w_slab, b_slab, action_dim, *, block_batch=256):
    """Fused PPONetwork forward: returns (action_mean, action_std, value)."""
    batch, state_dim = x.shape
    pad = w_slab.shape[-1]

    tb = min(block_batch, _round_up(batch, 8))      # sublane-aligned batch tile
    b_pad = _round_up(batch, tb)
    x_pad = jnp.zeros((b_pad, pad), jnp.float32).at[:batch, :state_dim].set(x)

    out = pl.pallas_call(
        functools.partial(ppo_fused_kernel, action_dim=action_dim),
        out_shape=jax.ShapeDtypeStruct((b_pad, pad), jnp.float32),
        grid=(b_pad // tb,),
        in_specs=[
            pl.BlockSpec((tb, pad), lambda i: (i, 0)),        # x tile
            pl.BlockSpec((3, pad, pad), lambda i: (0, 0, 0)),  # resident weights
            pl.BlockSpec((3, 1, pad), lambda i: (0, 0, 0)),    # resident biases
        ],
        out_specs=pl.BlockSpec((tb, pad), lambda i: (i, 0)),
        compiler_params=pltpu.CompilerParams(
            dimension_semantics=("parallel",)),
    )(x_pad, w_slab, b_slab)

    mean = out[:batch, :action_dim]
    std = out[:batch, action_dim:2 * action_dim]
    value = out[:batch, 2 * action_dim:2 * action_dim + 1]
    return mean, std, value


def init_params(key, state_dim, action_dim, hidden=HIDDEN):
    """Deterministic synthetic params (PyTorch Linear shapes, stored as (in,out))."""
    def linear(key, fan_in, fan_out):
        kw, kb = jax.random.split(key)
        bound = 1.0 / jnp.sqrt(fan_in)
        w = jax.random.uniform(kw, (fan_in, fan_out), jnp.float32, -bound, bound)
        b = jax.random.uniform(kb, (1, fan_out), jnp.float32, -bound, bound)
        return w, b

    keys = jax.random.split(key, 6)
    aw1, ab1 = linear(keys[0], state_dim, hidden)
    aw2, ab2 = linear(keys[1], hidden, hidden)
    aw3, ab3 = linear(keys[2], hidden, action_dim * 2)
    cw1, cb1 = linear(keys[3], state_dim, hidden)
    cw2, cb2 = linear(keys[4], hidden, hidden)
    cw3, cb3 = linear(keys[5], hidden, 1)
    return dict(
        aw1=aw1, ab1=ab1, aw2=aw2, ab2=ab2, aw3=aw3, ab3=ab3,
        cw1=cw1, cb1=cb1, cw2=cw2, cb2=cb2, cw3=cw3, cb3=cb3,
    )


def reference_forward(x, params, action_dim):
    """Pure-JAX reference (unfused) for correctness checking."""
    h = jnp.maximum(x @ params["aw1"] + params["ab1"], 0.0)
    h = jnp.maximum(h @ params["aw2"] + params["ab2"], 0.0)
    actor_out = h @ params["aw3"] + params["ab3"]
    mean = actor_out[:, :action_dim]
    std = jax.nn.softplus(actor_out[:, action_dim:]) + 1e-5
    g = jnp.maximum(x @ params["cw1"] + params["cb1"], 0.0)
    g = jnp.maximum(g @ params["cw2"] + params["cb2"], 0.0)
    value = g @ params["cw3"] + params["cb3"]
    return mean, std, value


if __name__ == "__main__":
    STATE_DIM = 32
    ACTION_DIM = 4
    BATCH = 8

    key = jax.random.PRNGKey(0)
    k_params, k_x = jax.random.split(key)
    params = init_params(k_params, STATE_DIM, ACTION_DIM)
    w_slab, b_slab = fuse_params(params, STATE_DIM, ACTION_DIM)
    x = jax.random.normal(k_x, (BATCH, STATE_DIM), dtype=jnp.float32)

    fwd = jax.jit(functools.partial(ppo_forward, action_dim=ACTION_DIM))
    mean, std, value = fwd(x, w_slab, b_slab)
    jax.block_until_ready((mean, std, value))

    ref_mean, ref_std, ref_value = reference_forward(x, params, ACTION_DIM)
    assert mean.shape == (BATCH, ACTION_DIM)
    assert std.shape == (BATCH, ACTION_DIM)
    assert value.shape == (BATCH, 1)
    assert jnp.allclose(mean, ref_mean, atol=2e-5, rtol=2e-5)
    assert jnp.allclose(std, ref_std, atol=2e-5, rtol=2e-5)
    assert jnp.allclose(value, ref_value, atol=2e-5, rtol=2e-5)
    assert bool(jnp.all(std > 0.0))

    print("KERNEL_OK")
</pallas_src>

<mosaic_0001>
module attributes {stable_mosaic.version = 11 : i64} {
  func.func @ppo_fused_kernel(%arg0: i32, %arg1: memref<8x128xf32, #tpu.memory_space<vmem>>, %arg2: memref<3x128x128xf32, #tpu.memory_space<vmem>>, %arg3: memref<3x1x128xf32, #tpu.memory_space<vmem>>, %arg4: memref<8x128xf32, #tpu.memory_space<vmem>>) attributes {dimension_semantics = [#tpu.dimension_semantics<parallel>], iteration_bounds = array<i64: 1>, scalar_prefetch = 0 : i64, scratch_operands = 0 : i64, tpu.core_type = #tpu.core_type<tc>, window_params = [{transform_indices = @transform_0, window_bounds = array<i64: 8, 128>}, {pipeline_mode = #tpu.pipeline_mode<synchronous>, transform_indices = @transform_1, window_bounds = array<i64: 3, 128, 128>}, {pipeline_mode = #tpu.pipeline_mode<synchronous>, transform_indices = @transform_2, window_bounds = array<i64: 3, 1, 128>}, {transform_indices = @transform_3, window_bounds = array<i64: 8, 128>}]} {
    %c0 = arith.constant 0 : index
    %c0_0 = arith.constant 0 : index
    %0 = vector.load %arg1[%c0, %c0_0] : memref<8x128xf32, #tpu.memory_space<vmem>>, vector<8x128xf32>
    %c0_1 = arith.constant 0 : index
    %c0_2 = arith.constant 0 : index
    %c0_3 = arith.constant 0 : index
    %1 = vector.load %arg2[%c0_1, %c0_2, %c0_3] : memref<3x128x128xf32, #tpu.memory_space<vmem>>, vector<1x128x128xf32>
    %2 = vector.shape_cast %1 : vector<1x128x128xf32> to vector<128x128xf32>
    %cst = arith.constant dense<0.000000e+00> : vector<8x128xf32>
    %3 = tpu.matmul %0, %2, %cst {dimension_numbers = #tpu.dot_dimension_numbers<[1], [0], [0], [1], [0, 0, 1, 1], [], []>} : vector<8x128xf32>, vector<128x128xf32>, vector<8x128xf32> -> vector<8x128xf32>
    %c0_4 = arith.constant 0 : index
    %c0_5 = arith.constant 0 : index
    %c0_6 = arith.constant 0 : index
    %4 = vector.load %arg3[%c0_4, %c0_5, %c0_6] : memref<3x1x128xf32, #tpu.memory_space<vmem>>, vector<1x1x128xf32>
    %5 = vector.shape_cast %4 : vector<1x1x128xf32> to vector<1x128xf32>
    %6 = vector.broadcast %5 : vector<1x128xf32> to vector<8x128xf32>
    %7 = arith.addf %3, %6 : vector<8x128xf32>
    %cst_7 = arith.constant 0.000000e+00 : f32
    %8 = vector.broadcast %cst_7 : f32 to vector<8x128xf32>
    %9 = arith.maximumf %7, %8 : vector<8x128xf32>
    %c1 = arith.constant 1 : index
    %c0_8 = arith.constant 0 : index
    %c0_9 = arith.constant 0 : index
    %10 = vector.load %arg2[%c1, %c0_8, %c0_9] : memref<3x128x128xf32, #tpu.memory_space<vmem>>, vector<1x128x128xf32>
    %11 = vector.shape_cast %10 : vector<1x128x128xf32> to vector<128x128xf32>
    %cst_10 = arith.constant dense<0.000000e+00> : vector<8x128xf32>
    %12 = tpu.matmul %9, %11, %cst_10 {dimension_numbers = #tpu.dot_dimension_numbers<[1], [0], [0], [1], [0, 0, 1, 1], [], []>} : vector<8x128xf32>, vector<128x128xf32>, vector<8x128xf32> -> vector<8x128xf32>
    %c1_11 = arith.constant 1 : index
    %c0_12 = arith.constant 0 : index
    %c0_13 = arith.constant 0 : index
    %13 = vector.load %arg3[%c1_11, %c0_12, %c0_13] : memref<3x1x128xf32, #tpu.memory_space<vmem>>, vector<1x1x128xf32>
    %14 = vector.shape_cast %13 : vector<1x1x128xf32> to vector<1x128xf32>
    %15 = vector.broadcast %14 : vector<1x128xf32> to vector<8x128xf32>
    %16 = arith.addf %12, %15 : vector<8x128xf32>
    %cst_14 = arith.constant 0.000000e+00 : f32
    %17 = vector.broadcast %cst_14 : f32 to vector<8x128xf32>
    %18 = arith.maximumf %16, %17 : vector<8x128xf32>
    %c2 = arith.constant 2 : index
    %c0_15 = arith.constant 0 : index
    %c0_16 = arith.constant 0 : index
    %19 = vector.load %arg2[%c2, %c0_15, %c0_16] : memref<3x128x128xf32, #tpu.memory_space<vmem>>, vector<1x128x128xf32>
    %20 = vector.shape_cast %19 : vector<1x128x128xf32> to vector<128x128xf32>
    %cst_17 = arith.constant dense<0.000000e+00> : vector<8x128xf32>
    %21 = tpu.matmul %18, %20, %cst_17 {dimension_numbers = #tpu.dot_dimension_numbers<[1], [0], [0], [1], [0, 0, 1, 1], [], []>} : vector<8x128xf32>, vector<128x128xf32>, vector<8x128xf32> -> vector<8x128xf32>
    %c2_18 = arith.constant 2 : index
    %c0_19 = arith.constant 0 : index
    %c0_20 = arith.constant 0 : index
    %22 = vector.load %arg3[%c2_18, %c0_19, %c0_20] : memref<3x1x128xf32, #tpu.memory_space<vmem>>, vector<1x1x128xf32>
    %23 = vector.shape_cast %22 : vector<1x1x128xf32> to vector<1x128xf32>
    %24 = vector.broadcast %23 : vector<1x128xf32> to vector<8x128xf32>
    %25 = arith.addf %21, %24 : vector<8x128xf32>
    %26 = tpu.iota {dimensions = array<i32: 1>} : vector<8x128xi32>
    %c4_i32 = arith.constant 4 : i32
    %27 = vector.broadcast %c4_i32 : i32 to vector<8x128xi32>
    %28 = arith.cmpi sge, %26, %27 : vector<8x128xi32>
    %c8_i32 = arith.constant 8 : i32
    %29 = vector.broadcast %c8_i32 : i32 to vector<8x128xi32>
    %30 = arith.cmpi slt, %26, %29 : vector<8x128xi32>
    %31 = arith.andi %28, %30 : vector<8x128xi1>
    %cst_21 = arith.constant 0.000000e+00 : f32
    %32 = vector.broadcast %cst_21 : f32 to vector<8x128xf32>
    %33 = arith.maximumf %25, %32 : vector<8x128xf32>
    %34 = vector.broadcast %cst_21 : f32 to vector<8x128xf32>
    %35 = arith.subf %25, %34 : vector<8x128xf32>
    %36 = arith.cmpf one, %35, %35 : vector<8x128xf32>
    %37 = vector.broadcast %cst_21 : f32 to vector<8x128xf32>
    %38 = arith.addf %25, %37 : vector<8x128xf32>
    %39 = math.absf %35 : vector<8x128xf32>
    %cst_22 = arith.constant 0.000000e+00 : f32
    %40 = vector.broadcast %cst_22 : f32 to vector<8x128xf32>
    %41 = arith.subf %40, %39 : vector<8x128xf32>
    %42 = math.exp %41 : vector<8x128xf32>
    %43 = math.log1p %42 : vector<8x128xf32>
    %44 = arith.addf %33, %43 : vector<8x128xf32>
    %45 = arith.select %36, %38, %44 : vector<8x128xi1>, vector<8x128xf32>
    %cst_23 = arith.constant 9.99999974E-6 : f32
    %46 = vector.broadcast %cst_23 : f32 to vector<8x128xf32>
    %47 = arith.addf %45, %46 : vector<8x128xf32>
    %48 = arith.select %31, %47, %25 : vector<8x128xi1>, vector<8x128xf32>
    %c0_24 = arith.constant 0 : index
    %c0_25 = arith.constant 0 : index
    %49 = vector.load %arg4[%c0_24, %c0_25] : memref<8x128xf32, #tpu.memory_space<vmem>>, vector<8x128xf32>
    tpu.vector_store %arg4[%c0_24, %c0_25], %48 {strides = array<i32>} : memref<8x128xf32, #tpu.memory_space<vmem>>, vector<8x128xf32>,
    return
  }
  func.func @transform_0(%arg0: i32) -> (i32, i32) {
    %c0_i32 = arith.constant 0 : i32
    %c0_i32_0 = arith.constant 0 : i32
    return %arg0, %c0_i32 : i32, i32
  }
  func.func @transform_1(%arg0: i32) -> (i32, i32, i32) {
    %c0_i32 = arith.constant 0 : i32
    %c0_i32_0 = arith.constant 0 : i32
    %c0_i32_1 = arith.constant 0 : i32
    %c0_i32_2 = arith.constant 0 : i32
    return %c0_i32, %c0_i32_0, %c0_i32_1 : i32, i32, i32
  }
  func.func @transform_2(%arg0: i32) -> (i32, i32, i32) {
    %c0_i32 = arith.constant 0 : i32
    %c0_i32_0 = arith.constant 0 : i32
    %c0_i32_1 = arith.constant 0 : i32
    %c0_i32_2 = arith.constant 0 : i32
    return %c0_i32, %c0_i32_0, %c0_i32_1 : i32, i32, i32
  }
  func.func @transform_3(%arg0: i32) -> (i32, i32) {
    %c0_i32 = arith.constant 0 : i32
    %c0_i32_0 = arith.constant 0 : i32
    return %arg0, %c0_i32 : i32, i32
  }
}

</mosaic_0001>

<bundles_post_ra>
// kernel: ppo_forward.1
= control target key start
LH: loop header
LB: loop body
LE: loop exit
PB: predicated region body
PF: predicated region fallthrough
CT: control target
= control target key end

     0   :  { %8 = vsyncpa [#allocation3], 0  ;;  %s226_s15 = smov [#allocation2]   ;;  %s227_s17 = smov 128   ;;  %s267_s0 = inlined_call_operand.vmem [shape: f32[8,128], index: 0, kind: input, shape index: {}]   ;;  %s268_s1 = inlined_call_operand.hbm [shape: f32[3,128,128], index: 1, kind: input, shape index: {}]   ;;  %s269_s2 = inlined_call_operand.vmem [shape: f32[3,1,128], index: 2, kind: input, shape index: {}]   ;;  %s270_s3 = inlined_call_operand.vmem [shape: f32[8,128], index: 3, kind: output, shape index: {}]  }
   0x1   :  { %s15_s14 = sshll.u32 %s268_s1, 4  ;;  %s17_s16 = sshll.u32 %s226_s15, 4  ;;  %s16_s14 = int_to_ptr.hbm [resolvable:$true] %s15_s14  ;;  %s18_s16 = int_to_ptr.vmem [resolvable:$true] %s17_s16 }
   0x2   :  { %s228_s18 = smov 8  }
   0x3   :  { %23 = dma.hbm_to_vmem [thread:$0]  %s16_s14, 6144, %s18_s16, [#allocation3], %s227_s17, %s227_s17, %s228_s18  }
   0x4   :  { %224 = dma.done.wait [#allocation3], 6144  }
   0x5   :  { %225 = vsyncadd [#allocation3], 4294961152  ;;  %v46_v0 = vld [vmem:[#allocation2 + $0x78] sm:$0xff]  ;;  %v45_v1 = vld [vmem:[#allocation2 + $0x70] sm:$0xff] }
   0x6   :  { %51 = vmatpush.msra.mxu0 %v46_v0  ;;  %v44_v2 = vld [vmem:[#allocation2 + $0x68] sm:$0xff]  ;;  %v43_v3 = vld [vmem:[#allocation2 + $0x60] sm:$0xff]  ;;  %v88_v4 = vld [vmem:[#allocation2 + $0xf8] sm:$0xff] }
   0x7   :  { %v42_v5 = vld [vmem:[#allocation2 + $0x58] sm:$0xff]  ;;  %94 = vmatpush.msra.mxu1 %v88_v4  ;;  %v87_v6 = vld [vmem:[#allocation2 + $0xf0] sm:$0xff]  ;;  %v86_v7 = vld [vmem:[#allocation2 + $0xe8] sm:$0xff] }
   0x8   :  { %52 = vmatpush.msra.mxu0 %v45_v1  ;;  %v41_v8 = vld [vmem:[#allocation2 + $0x50] sm:$0xff]  ;;  %v85_v9 = vld [vmem:[#allocation2 + $0xe0] sm:$0xff]  ;;  %v40_v10 = vld [vmem:[#allocation2 + $0x48] sm:$0xff] }
   0x9   :  { %95 = vmatpush.msra.mxu1 %v87_v6  ;;  %v84_v11 = vld [vmem:[#allocation2 + $0xd8] sm:$0xff]  ;;  %v39_v12 = vld [vmem:[#allocation2 + $0x40] sm:$0xff]  ;;  %v83_v13 = vld [vmem:[#allocation2 + $0xd0] sm:$0xff] }
   0xa   :  { %53 = vmatpush.msra.mxu0 %v44_v2  ;;  %v38_v14 = vld [vmem:[#allocation2 + $0x38] sm:$0xff]  ;;  %v82_v15 = vld [vmem:[#allocation2 + $0xc8] sm:$0xff]  ;;  %v37_v16 = vld [vmem:[#allocation2 + $0x30] sm:$0xff]  ;;  %v157_v2 = vlaneseq }
   0xb   :  { %96 = vmatpush.msra.mxu1 %v86_v7  ;;  %v81_v17 = vld [vmem:[#allocation2 + $0xc0] sm:$0xff]  ;;  %v36_v18 = vld [vmem:[#allocation2 + $0x28] sm:$0xff]  ;;  %v80_v19 = vld [vmem:[#allocation2 + $0xb8] sm:$0xff] }
   0xc   :  { %54 = vmatpush.msra.mxu0 %v43_v3  ;;  %v35_v20 = vld [vmem:[#allocation2 + $0x20] sm:$0xff]  ;;  %v79_v21 = vld [vmem:[#allocation2 + $0xb0] sm:$0xff]  ;;  %v34_v22 = vld [vmem:[#allocation2 + $0x18] sm:$0xff] }
   0xd   :  { %97 = vmatpush.msra.mxu1 %v85_v9  ;;  %v78_v23 = vld [vmem:[#allocation2 + $0xa8] sm:$0xff]  ;;  %v33_v24 = vld [vmem:[#allocation2 + $0x10] sm:$0xff]  ;;  %v77_v25 = vld [vmem:[#allocation2 + $0xa0] sm:$0xff] }
   0xe   :  { %55 = vmatpush.msra.mxu0 %v42_v5  ;;  %v32_v26 = vld [vmem:[#allocation2 + $0x8] sm:$0xff]  ;;  %v76_v27 = vld [vmem:[#allocation2 + $0x98] sm:$0xff]  ;;  %v31_v28 = vld [vmem:[#allocation2] sm:$0xff]  ;;  %v158_v5 = vand.u32 127, %v157_v2 }
   0xf   :  { %98 = vmatpush.msra.mxu1 %v84_v11  ;;  %v30_v29 = vld [vmem:[%s267_s0] sm:$0xff]  ;;  %v75_v30 = vld [vmem:[#allocation2 + $0x90] sm:$0xff]  ;;  %v74_v31 = vld [vmem:[#allocation2 + $0x88] sm:$0xff] }
  0x10   :  { %56 = vmatpush.msra.mxu0 %v41_v8  ;;  %v73_v32 = vld [vmem:[#allocation2 + $0x80] sm:$0xff]  ;;  %v131_v33 = vld [vmem:[#allocation2 + $0x178] sm:$0xff]  ;;  %v130_v34 = vld [vmem:[#allocation2 + $0x170] sm:$0xff]  ;;  %vm159_vm1 = vcmp.ge.s32.totalorder %v158_v5, 4  ;;  %vm160_vm2 = vcmp.lt.s32.totalorder %v158_v5, 8 }
  0x11   :  { %99 = vmatpush.msra.mxu1 %v83_v13  ;;  %137 = vmatpush.msra.mxu2 %v131_v33  ;;  %v129_v35 = vld [vmem:[#allocation2 + $0x168] sm:$0xff]  ;;  %v128_v36 = vld [vmem:[#allocation2 + $0x160] sm:$0xff]  ;;  %v127_v37 = vld [vmem:[#allocation2 + $0x158] sm:$0xff] }
  0x12   :  { %57 = vmatpush.msra.mxu0 %v40_v10  ;;  %v126_v38 = vld [vmem:[#allocation2 + $0x150] sm:$0xff]  ;;  %v125_v39 = vld [vmem:[#allocation2 + $0x148] sm:$0xff]  ;;  %v124_v40 = vld [vmem:[#allocation2 + $0x140] sm:$0xff] }
  0x13   :  { %100 = vmatpush.msra.mxu1 %v82_v15  ;;  %138 = vmatpush.msra.mxu2 %v130_v34  ;;  %v123_v41 = vld [vmem:[#allocation2 + $0x138] sm:$0xff]  ;;  %v122_v42 = vld [vmem:[#allocation2 + $0x130] sm:$0xff]  ;;  %v121_v43 = vld [vmem:[#allocation2 + $0x128] sm:$0xff] }
  0x14   :  { %58 = vmatpush.msra.mxu0 %v39_v12  ;;  %v120_v44 = vld [vmem:[#allocation2 + $0x120] sm:$0xff]  ;;  %v119_v45 = vld [vmem:[#allocation2 + $0x118] sm:$0xff]  ;;  %v118_v50 = vld [vmem:[#allocation2 + $0x110] sm:$0xff] }
  0x15   :  { %101 = vmatpush.msra.mxu1 %v81_v17  ;;  %139 = vmatpush.msra.mxu2 %v129_v35  ;;  %v193_v46 = vld [vmem:[%s269_s2] ss:$0 sm:$0xff]  ;;  %v117_v51 = vld [vmem:[#allocation2 + $0x108] sm:$0xff]  ;;  %v194_v53 = vld [vmem:[%s269_s2 + $0x1] ss:$0 sm:$0xff] }
  0x16   :  { %59 = vmatpush.msra.mxu0 %v38_v14  ;;  %v116_v52 = vld [vmem:[#allocation2 + $0x100] sm:$0xff]  ;;  %vm161_vm4 = vmand %vm159_vm1, %vm160_vm2 }
  0x17   :  { %102 = vmatpush.msra.mxu1 %v80_v19  ;;  %140 = vmatpush.msra.mxu2 %v128_v36  ;;  %v195_v57 = vld [vmem:[%s269_s2 + $0x2] ss:$0 sm:$0xff] }
  0x18   :  { %60 = vmatpush.msra.mxu0 %v37_v16 }
  0x19   :  { %103 = vmatpush.msra.mxu1 %v79_v21  ;;  %141 = vmatpush.msra.mxu2 %v127_v37 }
  0x1a   :  { %61 = vmatpush.msra.mxu0 %v36_v18 }
  0x1b   :  { %104 = vmatpush.msra.mxu1 %v78_v23  ;;  %142 = vmatpush.msra.mxu2 %v126_v38 }
  0x1c   :  { %62 = vmatpush.msra.mxu0 %v35_v20 }
  0x1d   :  { %105 = vmatpush.msra.mxu1 %v77_v25  ;;  %143 = vmatpush.msra.mxu2 %v125_v39 }
  0x1e   :  { %63 = vmatpush.msra.mxu0 %v34_v22 }
  0x1f   :  { %106 = vmatpush.msra.mxu1 %v76_v27  ;;  %144 = vmatpush.msra.mxu2 %v124_v40 }
  0x20   :  { %64 = vmatpush.msra.mxu0 %v33_v24 }
  0x21   :  { %107 = vmatpush.msra.mxu1 %v75_v30  ;;  %145 = vmatpush.msra.mxu2 %v123_v41 }
  0x22   :  { %65 = vmatpush.msra.mxu0 %v32_v26 }
  0x23   :  { %108 = vmatpush.msra.mxu1 %v74_v31  ;;  %146 = vmatpush.msra.mxu2 %v122_v42 }
  0x24   :  { %66 = vmatpush.msra.mxu0 %v31_v28 }
  0x25   :  { %67 = vmatmul.f32.vlgmr.msra.gmra.mxu0 %v30_v29  ;;  %109 = vmatpush.msra.mxu1 %v73_v32 }
  0x26   :  { %147 = vmatpush.msra.mxu2 %v121_v43 }
  0x28   :  { %148 = vmatpush.msra.mxu2 %v120_v44 }
  0x2a   :  { %149 = vmatpush.msra.mxu2 %v119_v45 }
  0x2c   :  { %150 = vmatpush.msra.mxu2 %v118_v50 }
  0x2e   :  { %151 = vmatpush.msra.mxu2 %v117_v51 }
  0x30   :  { %152 = vmatpush.msra.mxu2 %v116_v52 }
  0xa2   :  { %v68_v47 = vpop.f32.mrf.mxu0 }
  0xa3   :  { %v69_v48 = vadd.f32 %v193_v46, %v68_v47 }
  0xa5   :  { %v71_v49 = vmax.f32 %v69_v48, 0.0 }
  0xa7   :  { %110 = vmatmul.f32.vlgmr.msra.gmra.mxu1 %v71_v49 }
 0x124   :  { %v111_v54 = vpop.f32.mrf.mxu1 }
 0x125   :  { %v112_v55 = vadd.f32 %v194_v53, %v111_v54 }
 0x127   :  { %v114_v56 = vmax.f32 %v112_v55, 0.0 }
 0x129   :  { %153 = vmatmul.f32.vlgmr.msra.gmra.mxu2 %v114_v56 }
 0x1ac   :  { %v154_v58 = vpop.f32.mrf.mxu2 }
 0x1ad   :  { %v155_v59 = vadd.f32 %v195_v57, %v154_v58 }
 0x1af   :  { %v165_v60 = vand.u32 2147483647, %v155_v59  ;;  %v162_v9 = vmax.f32 %v155_v59, 0.0  ;;  %vm163_vm3 = vcmp.ne.f32.partialorder %v155_v59, %v155_v59 }
 0x1b1   :  { %v166_v61 = vsub.f32 0.0, %v165_v60 }
 0x1b3   :  { %v167_v62 = vmul.f32 1.442695, %v166_v61 }
 0x1b5   :  { %196 = vpow2.f32 %v167_v62 }
 0x1bb   :  { %v197_v63 = vpop.eup %196 }
 0x1bc   :  { %v169_v0 = vadd.f32 1.0, %v197_v63  ;;  %v172_v1 = vmul.f32 -0.5, %v197_v63  ;;  %v175_v4 = vand.u32 2147483647, %v197_v63 }
 0x1be   :  { %198 = vlog2.f32 %v169_v0  ;;  %v173_v3 = vadd.f32 1.0, %v172_v1  ;;  %vm176_vm0 = vcmp.lt.f32.partialorder %v175_v4, 0.0004427343 }
 0x1c0   :  { %v174_v8 = vmul.f32 %v197_v63, %v173_v3 }
 0x1c4   :  { %v199_v6 = vpop.eup %198 }
 0x1c5   :  { %v171_v7 = vmul.f32 0.6931472, %v199_v6 }
 0x1c7   :  { %v177_v10 = vsel %vm176_vm0, %v174_v8, %v171_v7 }
 0x1c8   :  { %v178_v11 = vadd.f32 %v177_v10, %v162_v9 }
 0x1ca   :  { %v179_v12 = vsel %vm163_vm3, %v155_v59, %v178_v11 }
 0x1cb   :  { %v180_v13 = vadd.f32 1e-05, %v179_v12 }
 0x1cd   :  { %v181_v14 = vsel %vm161_vm4, %v180_v13, %v155_v59 }
 0x1ce   :  { %182 = vst [vmem:[%s270_s3] sm:$0xff] %v181_v14 }
 0x1cf   :  { %187 = vsyncpa [#allocation3], 1 }

</bundles_post_ra>
